<compile_context>
chip_gen: v5e
topology: v5e:2x2
jax: 0.10.0
libtpu: 0.0.40
codegen_flags: <defaults>
</compile_context>

<pallas_src>
import functools

import jax
import jax.numpy as jnp
from jax.experimental import pallas as pl
from jax.experimental.pallas import tpu as pltpu

N_CROPS = 17                              # len(CROP_NAMES)
N_SMTS = 4
OUTPUT_SIZE = N_SMTS + 1 + N_CROPS + 1    # 23


def _ru8(n):
    return (n + 7) // 8 * 8


def _param_offsets(I, H):
    """Row offsets of each parameter block inside the packed (PROWS, 4*H) slab."""
    r_wih = 0
    r_whh = _ru8(I)
    r_b = r_whh + _ru8(H)
    r_wlin = _ru8(r_b + 1)
    r_blin = r_wlin + _ru8(H)
    prows = _ru8(r_blin + 1)
    return r_wih, r_whh, r_b, r_wlin, r_blin, prows


def _lstm_prescriptor_kernel(x_ref, state_ref, params_ref, out_ref, *,
                             T, BP, I, H, r_wih, r_whh, r_b, r_wlin, r_blin):
    """One candidate per grid step; everything for a candidate fits in VMEM at these sizes.

    x_ref:      (1, T*BP, I)   f32  time-major input, batch padded to BP=8 rows per step
    state_ref:  (1, 2*BP, H)   f32  rows [0:BP) = h0 (padded), rows [BP:2BP) = c0 (padded)
    params_ref: (1, PROWS, 4H) f32  packed W_ih^T | W_hh^T | (b_ih+b_hh) | W_lin^T | b_lin
    out_ref:    (1, BP, 4H)    f32  lane-dense padded output; wrapper slices to (B, 23)
    """
    G = 4 * H

    # (1)+(3): hoisted input projection for ALL time steps with bias fused — one MXU matmul,
    # sublane-aligned BP-row groups per step, nothing but h@W_hh left on the serial chain.
    wih = params_ref[0, r_wih:r_wih + I, :]                         # (I, G)
    bias = params_ref[0, r_b:r_b + 1, :]                            # (1, G) = b_ih + b_hh
    xg_all = jnp.dot(x_ref[0], wih,
                     preferred_element_type=jnp.float32) + bias     # (T*BP, G)

    h = state_ref[0, 0:BP, :]                                       # (BP, H)
    c = state_ref[0, BP:2 * BP, :]                                  # (BP, H)

    # Lane mask selecting the tanh ("g") gate block (gate order i, f, g, o). Hoisted.
    gl = jax.lax.broadcasted_iota(jnp.int32, (BP, G), 1)
    g_mask = (gl >= 2 * H) & (gl < 3 * H)

    # (2): fully unrolled recurrence (T static, small).  Per step: one (BP,H)@(H,G) matmul,
    # one aligned vreg add, one full-vreg sigmoid + one full-vreg tanh + lane select.
    for t in range(T):
        gates = xg_all[t * BP:(t + 1) * BP, :] + jnp.dot(
            h, params_ref[0, r_whh:r_whh + H, :],                   # W_hh^T streamed from VMEM (4 vregs)
            preferred_element_type=jnp.float32)                     # (BP, G)
        act = jnp.where(g_mask, jnp.tanh(gates), jax.nn.sigmoid(gates))
        # Per-gate realignment: offset lane slices lower to XLU lane rotates (pltpu.roll
        # by 32/64/96 equivalents), off the VPU/EUP critical slots.
        i_g = act[:, 0 * H:1 * H]
        f_g = act[:, 1 * H:2 * H]
        g_g = act[:, 2 * H:3 * H]
        o_g = act[:, 3 * H:4 * H]
        c = f_g * c + i_g * g_g
        h = o_g * jnp.tanh(c)

    # Final linear layer on hn (lane-dense padded output; only first OUTPUT_SIZE lanes real).
    out = jnp.dot(h, params_ref[0, r_wlin:r_wlin + H, :],
                  preferred_element_type=jnp.float32) + params_ref[0, r_blin:r_blin + 1, :]

    # (4): single masked full-vreg post-processing pass; constants built in-kernel (no DMA).
    lane = jax.lax.broadcasted_iota(jnp.int32, out.shape, 1)
    crop_mask = (lane >= N_SMTS + 1) & (lane < N_SMTS + 1 + N_CROPS)
    scales = jnp.where(lane < N_SMTS, 100.0,
             jnp.where(lane == N_SMTS, 1000.0,
             jnp.where(lane == N_SMTS + 1 + N_CROPS, 364.0, 0.0))).astype(jnp.float32)

    sig = jax.nn.sigmoid(out) * scales                              # sigmoid * per-lane scale

    logits = jnp.where(crop_mask, out, jnp.float32(-1e30))          # finite sentinel (no NaN risk)
    m = jnp.max(logits, axis=1, keepdims=True)
    e = jnp.where(crop_mask, jnp.exp(logits - m), 0.0)
    denom = jnp.sum(e, axis=1, keepdims=True)
    probs = e * pl.reciprocal(denom, approx=False)                  # exact parity with torch softmax

    out_ref[0] = jnp.where(crop_mask, probs, sig)


def pack_lstm_prescriptor_params(w_ih, w_hh, b_ih, b_hh, w_lin, b_lin):
    """Pack a population's weights into one (P, PROWS, 4*H) f32 slab.

    Cacheable across forward calls (weights are reused across a generation).
    Shapes (leading population axis P):
      w_ih: (P, 4H, I), w_hh: (P, 4H, H), b_ih/b_hh: (P, 4H), w_lin: (P, O, H), b_lin: (P, O)
    """
    f32 = jnp.float32
    P, G, I = w_ih.shape
    H = G // 4
    O = w_lin.shape[1]
    assert O <= G, "output_size must fit within the 4*H gate lane width"
    r_wih, r_whh, r_b, r_wlin, r_blin, prows = _param_offsets(I, H)

    p = jnp.zeros((P, prows, G), f32)
    p = p.at[:, r_wih:r_wih + I, :].set(jnp.swapaxes(w_ih, 1, 2).astype(f32))
    p = p.at[:, r_whh:r_whh + H, :].set(jnp.swapaxes(w_hh, 1, 2).astype(f32))
    p = p.at[:, r_b, :].set((b_ih + b_hh).astype(f32))
    p = p.at[:, r_wlin:r_wlin + H, :O].set(jnp.swapaxes(w_lin, 1, 2).astype(f32))
    p = p.at[:, r_blin, :O].set(b_lin.astype(f32))
    return p


@jax.jit
def lstm_prescriptor_population_forward(x, h0, c0, packed_params):
    """Population forward: x (P,B,T,I), h0/c0 (P,B,H), packed_params (P,PROWS,4H) -> (P,B,23)."""
    f32 = jnp.float32
    P, B, T, I = x.shape
    H = h0.shape[-1]
    G = 4 * H
    r_wih, r_whh, r_b, r_wlin, r_blin, prows = _param_offsets(I, H)
    assert prows == packed_params.shape[1]
    BP = max(8, _ru8(B))                       # pad batch rows to a full 8-sublane group

    # (3): time-major, batch padded so each step's rows are an aligned sublane group.
    xp = jnp.zeros((P, T, BP, I), f32).at[:, :, :B, :].set(
        jnp.transpose(x, (0, 2, 1, 3)).astype(f32)).reshape(P, T * BP, I)

    # Packed initial state: rows [0:BP) = h0, rows [BP:2BP) = c0 (padded rows zero).
    state = jnp.zeros((P, 2 * BP, H), f32)
    state = state.at[:, 0:B, :].set(h0.astype(f32))
    state = state.at[:, BP:BP + B, :].set(c0.astype(f32))

    kernel = functools.partial(_lstm_prescriptor_kernel, T=T, BP=BP, I=I, H=H,
                               r_wih=r_wih, r_whh=r_whh, r_b=r_b,
                               r_wlin=r_wlin, r_blin=r_blin)

    out = pl.pallas_call(
        kernel,
        out_shape=jax.ShapeDtypeStruct((P, BP, G), f32),
        grid=(P,),
        in_specs=[
            pl.BlockSpec((1, T * BP, I), lambda p: (p, 0, 0)),
            pl.BlockSpec((1, 2 * BP, H), lambda p: (p, 0, 0)),
            pl.BlockSpec((1, prows, G), lambda p: (p, 0, 0)),
        ],
        out_specs=pl.BlockSpec((1, BP, G), lambda p: (p, 0, 0)),
        compiler_params=pltpu.CompilerParams(
            dimension_semantics=("parallel",)),        # shards candidates across TCs on v7x
    )(xp, state, packed_params)

    return out[:, :B, :OUTPUT_SIZE]


def lstm_prescriptor_forward(x, h0, c0, w_ih, w_hh, b_ih, b_hh, w_lin, b_lin):
    """Single-candidate (module-parity) forward. x: (B, T, I) batch-first. Returns (B, 23)."""
    params = pack_lstm_prescriptor_params(
        w_ih[None], w_hh[None], b_ih[None], b_hh[None], w_lin[None], b_lin[None])
    return lstm_prescriptor_population_forward(x[None], h0[None], c0[None], params)[0]


def _reference_forward(x, h0, c0, w_ih, w_hh, b_ih, b_hh, w_lin, b_lin):
    """Pure-JAX reference mirroring the PyTorch semantics (sanity check)."""
    B, T, I = x.shape
    H = h0.shape[1]
    h, c = h0, c0
    for t in range(T):
        gates = x[:, t, :] @ w_ih.T + b_ih + h @ w_hh.T + b_hh
        i_g = jax.nn.sigmoid(gates[:, 0 * H:1 * H])
        f_g = jax.nn.sigmoid(gates[:, 1 * H:2 * H])
        g_g = jnp.tanh(gates[:, 2 * H:3 * H])
        o_g = jax.nn.sigmoid(gates[:, 3 * H:4 * H])
        c = f_g * c + i_g * g_g
        h = o_g * jnp.tanh(c)
    out = h @ w_lin.T + b_lin
    smts = jax.nn.sigmoid(out[:, 0:4]) * 100.0
    max_irr = jax.nn.sigmoid(out[:, 4:5]) * 1000.0
    crop = jax.nn.softmax(out[:, 5:5 + N_CROPS], axis=1)
    pdate = jax.nn.sigmoid(out[:, 22:23]) * 364.0
    return jnp.concatenate([smts, max_irr, crop, pdate], axis=1)


if __name__ == "__main__":
    B, T = 2, 8
    INPUT_SIZE, HIDDEN_SIZE = 4, 32
    O = OUTPUT_SIZE  # 23

    key = jax.random.PRNGKey(0)
    ks = jax.random.split(key, 10)
    bound = 1.0 / (HIDDEN_SIZE ** 0.5)

    x = jax.random.normal(ks[0], (B, T, INPUT_SIZE), jnp.float32)
    # torch.randn initial states (deterministic here)
    h0 = jax.random.normal(ks[1], (B, HIDDEN_SIZE), jnp.float32)
    c0 = jax.random.normal(ks[2], (B, HIDDEN_SIZE), jnp.float32)
    # LSTM parameters (PyTorch uniform(-1/sqrt(H), 1/sqrt(H)) init, gate order i,f,g,o)
    w_ih = jax.random.uniform(ks[3], (4 * HIDDEN_SIZE, INPUT_SIZE), jnp.float32, -bound, bound)
    w_hh = jax.random.uniform(ks[4], (4 * HIDDEN_SIZE, HIDDEN_SIZE), jnp.float32, -bound, bound)
    b_ih = jax.random.uniform(ks[5], (4 * HIDDEN_SIZE,), jnp.float32, -bound, bound)
    b_hh = jax.random.uniform(ks[6], (4 * HIDDEN_SIZE,), jnp.float32, -bound, bound)
    # Linear parameters
    w_lin = jax.random.uniform(ks[7], (O, HIDDEN_SIZE), jnp.float32, -bound, bound)
    b_lin = jax.random.uniform(ks[8], (O,), jnp.float32, -bound, bound)

    # Single-candidate (module) parity check.
    out = lstm_prescriptor_forward(x, h0, c0, w_ih, w_hh, b_ih, b_hh, w_lin, b_lin)
    out = jax.block_until_ready(out)
    ref = _reference_forward(x, h0, c0, w_ih, w_hh, b_ih, b_hh, w_lin, b_lin)
    assert out.shape == (B, OUTPUT_SIZE), out.shape
    assert jnp.allclose(out, ref, atol=2e-4, rtol=2e-4), (out, ref)

    # Small population check: P candidates in ONE pallas_call on a "parallel" grid axis.
    P = 4
    pks = jax.random.split(jax.random.PRNGKey(1), 9)
    xs = jax.random.normal(pks[0], (P, B, T, INPUT_SIZE), jnp.float32)
    h0s = jax.random.normal(pks[1], (P, B, HIDDEN_SIZE), jnp.float32)
    c0s = jax.random.normal(pks[2], (P, B, HIDDEN_SIZE), jnp.float32)
    w_ihs = jax.random.uniform(pks[3], (P, 4 * HIDDEN_SIZE, INPUT_SIZE), jnp.float32, -bound, bound)
    w_hhs = jax.random.uniform(pks[4], (P, 4 * HIDDEN_SIZE, HIDDEN_SIZE), jnp.float32, -bound, bound)
    b_ihs = jax.random.uniform(pks[5], (P, 4 * HIDDEN_SIZE), jnp.float32, -bound, bound)
    b_hhs = jax.random.uniform(pks[6], (P, 4 * HIDDEN_SIZE), jnp.float32, -bound, bound)
    w_lins = jax.random.uniform(pks[7], (P, O, HIDDEN_SIZE), jnp.float32, -bound, bound)
    b_lins = jax.random.uniform(pks[8], (P, O), jnp.float32, -bound, bound)

    pparams = pack_lstm_prescriptor_params(w_ihs, w_hhs, b_ihs, b_hhs, w_lins, b_lins)
    pouts = jax.block_until_ready(
        lstm_prescriptor_population_forward(xs, h0s, c0s, pparams))
    assert pouts.shape == (P, B, OUTPUT_SIZE), pouts.shape
    for p in range(P):
        refp = _reference_forward(xs[p], h0s[p], c0s[p], w_ihs[p], w_hhs[p],
                                  b_ihs[p], b_hhs[p], w_lins[p], b_lins[p])
        assert jnp.allclose(pouts[p], refp, atol=2e-4, rtol=2e-4), p

    print("KERNEL_OK")
</pallas_src>

<mosaic_0001>
module attributes {stable_mosaic.version = 11 : i64} {
  func.func @_lstm_prescriptor_kernel(%arg0: i32, %arg1: memref<1x64x4xf32, #tpu.memory_space<vmem>>, %arg2: memref<1x16x32xf32, #tpu.memory_space<vmem>>, %arg3: memref<1x88x128xf32, #tpu.memory_space<vmem>>, %arg4: memref<1x8x128xf32, #tpu.memory_space<vmem>>) attributes {dimension_semantics = [#tpu.dimension_semantics<parallel>], iteration_bounds = array<i64: 1>, scalar_prefetch = 0 : i64, scratch_operands = 0 : i64, tpu.core_type = #tpu.core_type<tc>, window_params = [{transform_indices = @transform_0, window_bounds = array<i64: 1, 64, 4>}, {transform_indices = @transform_1, window_bounds = array<i64: 1, 16, 32>}, {transform_indices = @transform_2, window_bounds = array<i64: 1, 88, 128>}, {transform_indices = @transform_3, window_bounds = array<i64: 1, 8, 128>}]} {
    %c0 = arith.constant 0 : index
    %c0_0 = arith.constant 0 : index
    %c0_1 = arith.constant 0 : index
    %0 = vector.load %arg3[%c0, %c0_0, %c0_1] : memref<1x88x128xf32, #tpu.memory_space<vmem>>, vector<1x4x128xf32>
    %1 = vector.shape_cast %0 : vector<1x4x128xf32> to vector<4x128xf32>
    %c0_2 = arith.constant 0 : index
    %c40 = arith.constant 40 : index
    %c0_3 = arith.constant 0 : index
    %2 = vector.load %arg3[%c0_2, %c40, %c0_3] : memref<1x88x128xf32, #tpu.memory_space<vmem>>, vector<1x1x128xf32>
    %3 = vector.shape_cast %2 : vector<1x1x128xf32> to vector<1x128xf32>
    %c0_4 = arith.constant 0 : index
    %c0_5 = arith.constant 0 : index
    %c0_6 = arith.constant 0 : index
    %4 = vector.load %arg1[%c0_4, %c0_5, %c0_6] : memref<1x64x4xf32, #tpu.memory_space<vmem>>, vector<1x64x4xf32>
    %5 = vector.shape_cast %4 : vector<1x64x4xf32> to vector<64x4xf32>
    %cst = arith.constant dense<0.000000e+00> : vector<64x128xf32>
    %6 = tpu.matmul %5, %1, %cst {dimension_numbers = #tpu.dot_dimension_numbers<[1], [0], [0], [1], [0, 0, 1, 1], [], []>} : vector<64x4xf32>, vector<4x128xf32>, vector<64x128xf32> -> vector<64x128xf32>
    %7 = vector.broadcast %3 : vector<1x128xf32> to vector<64x128xf32>
    %8 = arith.addf %6, %7 : vector<64x128xf32>
    %c0_7 = arith.constant 0 : index
    %c0_8 = arith.constant 0 : index
    %c0_9 = arith.constant 0 : index
    %9 = vector.load %arg2[%c0_7, %c0_8, %c0_9] : memref<1x16x32xf32, #tpu.memory_space<vmem>>, vector<1x8x32xf32>
    %10 = vector.shape_cast %9 : vector<1x8x32xf32> to vector<8x32xf32>
    %c0_10 = arith.constant 0 : index
    %c8 = arith.constant 8 : index
    %c0_11 = arith.constant 0 : index
    %11 = vector.load %arg2[%c0_10, %c8, %c0_11] : memref<1x16x32xf32, #tpu.memory_space<vmem>>, vector<1x8x32xf32>
    %12 = vector.shape_cast %11 : vector<1x8x32xf32> to vector<8x32xf32>
    %13 = tpu.iota {dimensions = array<i32: 1>} : vector<8x128xi32>
    %c64_i32 = arith.constant 64 : i32
    %14 = vector.broadcast %c64_i32 : i32 to vector<8x128xi32>
    %15 = arith.cmpi sge, %13, %14 : vector<8x128xi32>
    %c96_i32 = arith.constant 96 : i32
    %16 = vector.broadcast %c96_i32 : i32 to vector<8x128xi32>
    %17 = arith.cmpi slt, %13, %16 : vector<8x128xi32>
    %18 = arith.andi %15, %17 : vector<8x128xi1>
    %19 = vector.extract_strided_slice %8 {offsets = [0, 0], sizes = [8, 128], strides = [1, 1]} : vector<64x128xf32> to vector<8x128xf32>
    %c0_12 = arith.constant 0 : index
    %c8_13 = arith.constant 8 : index
    %c0_14 = arith.constant 0 : index
    %20 = vector.load %arg3[%c0_12, %c8_13, %c0_14] : memref<1x88x128xf32, #tpu.memory_space<vmem>>, vector<1x32x128xf32>
    %21 = vector.shape_cast %20 : vector<1x32x128xf32> to vector<32x128xf32>
    %cst_15 = arith.constant dense<0.000000e+00> : vector<8x128xf32>
    %22 = tpu.matmul %10, %21, %cst_15 {dimension_numbers = #tpu.dot_dimension_numbers<[1], [0], [0], [1], [0, 0, 1, 1], [], []>} : vector<8x32xf32>, vector<32x128xf32>, vector<8x128xf32> -> vector<8x128xf32>
    %23 = arith.addf %19, %22 : vector<8x128xf32>
    %24 = math.tanh %23 : vector<8x128xf32>
    %25 = arith.negf %23 : vector<8x128xf32>
    %26 = math.exp %25 : vector<8x128xf32>
    %cst_16 = arith.constant 1.000000e+00 : f32
    %27 = vector.broadcast %cst_16 : f32 to vector<8x128xf32>
    %28 = arith.addf %27, %26 : vector<8x128xf32>
    %29 = arith.divf %27, %28 : vector<8x128xf32>
    %30 = arith.select %18, %24, %29 : vector<8x128xi1>, vector<8x128xf32>
    %31 = vector.extract_strided_slice %30 {offsets = [0, 0], sizes = [8, 32], strides = [1, 1]} : vector<8x128xf32> to vector<8x32xf32>
    %32 = vector.extract_strided_slice %30 {offsets = [0, 32], sizes = [8, 32], strides = [1, 1]} : vector<8x128xf32> to vector<8x32xf32>
    %33 = vector.extract_strided_slice %30 {offsets = [0, 64], sizes = [8, 32], strides = [1, 1]} : vector<8x128xf32> to vector<8x32xf32>
    %34 = vector.extract_strided_slice %30 {offsets = [0, 96], sizes = [8, 32], strides = [1, 1]} : vector<8x128xf32> to vector<8x32xf32>
    %35 = arith.mulf %32, %12 : vector<8x32xf32>
    %36 = arith.mulf %31, %33 : vector<8x32xf32>
    %37 = arith.addf %35, %36 : vector<8x32xf32>
    %38 = math.tanh %37 : vector<8x32xf32>
    %39 = arith.mulf %34, %38 : vector<8x32xf32>
    %40 = vector.extract_strided_slice %8 {offsets = [8, 0], sizes = [8, 128], strides = [1, 1]} : vector<64x128xf32> to vector<8x128xf32>
    %c0_17 = arith.constant 0 : index
    %c8_18 = arith.constant 8 : index
    %c0_19 = arith.constant 0 : index
    %41 = vector.load %arg3[%c0_17, %c8_18, %c0_19] : memref<1x88x128xf32, #tpu.memory_space<vmem>>, vector<1x32x128xf32>
    %42 = vector.shape_cast %41 : vector<1x32x128xf32> to vector<32x128xf32>
    %cst_20 = arith.constant dense<0.000000e+00> : vector<8x128xf32>
    %43 = tpu.matmul %39, %42, %cst_20 {dimension_numbers = #tpu.dot_dimension_numbers<[1], [0], [0], [1], [0, 0, 1, 1], [], []>} : vector<8x32xf32>, vector<32x128xf32>, vector<8x128xf32> -> vector<8x128xf32>
    %44 = arith.addf %40, %43 : vector<8x128xf32>
    %45 = math.tanh %44 : vector<8x128xf32>
    %46 = arith.negf %44 : vector<8x128xf32>
    %47 = math.exp %46 : vector<8x128xf32>
    %cst_21 = arith.constant 1.000000e+00 : f32
    %48 = vector.broadcast %cst_21 : f32 to vector<8x128xf32>
    %49 = arith.addf %48, %47 : vector<8x128xf32>
    %50 = arith.divf %48, %49 : vector<8x128xf32>
    %51 = arith.select %18, %45, %50 : vector<8x128xi1>, vector<8x128xf32>
    %52 = vector.extract_strided_slice %51 {offsets = [0, 0], sizes = [8, 32], strides = [1, 1]} : vector<8x128xf32> to vector<8x32xf32>
    %53 = vector.extract_strided_slice %51 {offsets = [0, 32], sizes = [8, 32], strides = [1, 1]} : vector<8x128xf32> to vector<8x32xf32>
    %54 = vector.extract_strided_slice %51 {offsets = [0, 64], sizes = [8, 32], strides = [1, 1]} : vector<8x128xf32> to vector<8x32xf32>
    %55 = vector.extract_strided_slice %51 {offsets = [0, 96], sizes = [8, 32], strides = [1, 1]} : vector<8x128xf32> to vector<8x32xf32>
    %56 = arith.mulf %53, %37 : vector<8x32xf32>
    %57 = arith.mulf %52, %54 : vector<8x32xf32>
    %58 = arith.addf %56, %57 : vector<8x32xf32>
    %59 = math.tanh %58 : vector<8x32xf32>
    %60 = arith.mulf %55, %59 : vector<8x32xf32>
    %61 = vector.extract_strided_slice %8 {offsets = [16, 0], sizes = [8, 128], strides = [1, 1]} : vector<64x128xf32> to vector<8x128xf32>
    %c0_22 = arith.constant 0 : index
    %c8_23 = arith.constant 8 : index
    %c0_24 = arith.constant 0 : index
    %62 = vector.load %arg3[%c0_22, %c8_23, %c0_24] : memref<1x88x128xf32, #tpu.memory_space<vmem>>, vector<1x32x128xf32>
    %63 = vector.shape_cast %62 : vector<1x32x128xf32> to vector<32x128xf32>
    %cst_25 = arith.constant dense<0.000000e+00> : vector<8x128xf32>
    %64 = tpu.matmul %60, %63, %cst_25 {dimension_numbers = #tpu.dot_dimension_numbers<[1], [0], [0], [1], [0, 0, 1, 1], [], []>} : vector<8x32xf32>, vector<32x128xf32>, vector<8x128xf32> -> vector<8x128xf32>
    %65 = arith.addf %61, %64 : vector<8x128xf32>
    %66 = math.tanh %65 : vector<8x128xf32>
    %67 = arith.negf %65 : vector<8x128xf32>
    %68 = math.exp %67 : vector<8x128xf32>
    %cst_26 = arith.constant 1.000000e+00 : f32
    %69 = vector.broadcast %cst_26 : f32 to vector<8x128xf32>
    %70 = arith.addf %69, %68 : vector<8x128xf32>
    %71 = arith.divf %69, %70 : vector<8x128xf32>
    %72 = arith.select %18, %66, %71 : vector<8x128xi1>, vector<8x128xf32>
    %73 = vector.extract_strided_slice %72 {offsets = [0, 0], sizes = [8, 32], strides = [1, 1]} : vector<8x128xf32> to vector<8x32xf32>
    %74 = vector.extract_strided_slice %72 {offsets = [0, 32], sizes = [8, 32], strides = [1, 1]} : vector<8x128xf32> to vector<8x32xf32>
    %75 = vector.extract_strided_slice %72 {offsets = [0, 64], sizes = [8, 32], strides = [1, 1]} : vector<8x128xf32> to vector<8x32xf32>
    %76 = vector.extract_strided_slice %72 {offsets = [0, 96], sizes = [8, 32], strides = [1, 1]} : vector<8x128xf32> to vector<8x32xf32>
    %77 = arith.mulf %74, %58 : vector<8x32xf32>
    %78 = arith.mulf %73, %75 : vector<8x32xf32>
    %79 = arith.addf %77, %78 : vector<8x32xf32>
    %80 = math.tanh %79 : vector<8x32xf32>
    %81 = arith.mulf %76, %80 : vector<8x32xf32>
    %82 = vector.extract_strided_slice %8 {offsets = [24, 0], sizes = [8, 128], strides = [1, 1]} : vector<64x128xf32> to vector<8x128xf32>
    %c0_27 = arith.constant 0 : index
    %c8_28 = arith.constant 8 : index
    %c0_29 = arith.constant 0 : index
    %83 = vector.load %arg3[%c0_27, %c8_28, %c0_29] : memref<1x88x128xf32, #tpu.memory_space<vmem>>, vector<1x32x128xf32>
    %84 = vector.shape_cast %83 : vector<1x32x128xf32> to vector<32x128xf32>
    %cst_30 = arith.constant dense<0.000000e+00> : vector<8x128xf32>
    %85 = tpu.matmul %81, %84, %cst_30 {dimension_numbers = #tpu.dot_dimension_numbers<[1], [0], [0], [1], [0, 0, 1, 1], [], []>} : vector<8x32xf32>, vector<32x128xf32>, vector<8x128xf32> -> vector<8x128xf32>
    %86 = arith.addf %82, %85 : vector<8x128xf32>
    %87 = math.tanh %86 : vector<8x128xf32>
    %88 = arith.negf %86 : vector<8x128xf32>
    %89 = math.exp %88 : vector<8x128xf32>
    %cst_31 = arith.constant 1.000000e+00 : f32
    %90 = vector.broadcast %cst_31 : f32 to vector<8x128xf32>
    %91 = arith.addf %90, %89 : vector<8x128xf32>
    %92 = arith.divf %90, %91 : vector<8x128xf32>
    %93 = arith.select %18, %87, %92 : vector<8x128xi1>, vector<8x128xf32>
    %94 = vector.extract_strided_slice %93 {offsets = [0, 0], sizes = [8, 32], strides = [1, 1]} : vector<8x128xf32> to vector<8x32xf32>
    %95 = vector.extract_strided_slice %93 {offsets = [0, 32], sizes = [8, 32], strides = [1, 1]} : vector<8x128xf32> to vector<8x32xf32>
    %96 = vector.extract_strided_slice %93 {offsets = [0, 64], sizes = [8, 32], strides = [1, 1]} : vector<8x128xf32> to vector<8x32xf32>
    %97 = vector.extract_strided_slice %93 {offsets = [0, 96], sizes = [8, 32], strides = [1, 1]} : vector<8x128xf32> to vector<8x32xf32>
    %98 = arith.mulf %95, %79 : vector<8x32xf32>
    %99 = arith.mulf %94, %96 : vector<8x32xf32>
    %100 = arith.addf %98, %99 : vector<8x32xf32>
    %101 = math.tanh %100 : vector<8x32xf32>
    %102 = arith.mulf %97, %101 : vector<8x32xf32>
    %103 = vector.extract_strided_slice %8 {offsets = [32, 0], sizes = [8, 128], strides = [1, 1]} : vector<64x128xf32> to vector<8x128xf32>
    %c0_32 = arith.constant 0 : index
    %c8_33 = arith.constant 8 : index
    %c0_34 = arith.constant 0 : index
    %104 = vector.load %arg3[%c0_32, %c8_33, %c0_34] : memref<1x88x128xf32, #tpu.memory_space<vmem>>, vector<1x32x128xf32>
    %105 = vector.shape_cast %104 : vector<1x32x128xf32> to vector<32x128xf32>
    %cst_35 = arith.constant dense<0.000000e+00> : vector<8x128xf32>
    %106 = tpu.matmul %102, %105, %cst_35 {dimension_numbers = #tpu.dot_dimension_numbers<[1], [0], [0], [1], [0, 0, 1, 1], [], []>} : vector<8x32xf32>, vector<32x128xf32>, vector<8x128xf32> -> vector<8x128xf32>
    %107 = arith.addf %103, %106 : vector<8x128xf32>
    %108 = math.tanh %107 : vector<8x128xf32>
    %109 = arith.negf %107 : vector<8x128xf32>
    %110 = math.exp %109 : vector<8x128xf32>
    %cst_36 = arith.constant 1.000000e+00 : f32
    %111 = vector.broadcast %cst_36 : f32 to vector<8x128xf32>
    %112 = arith.addf %111, %110 : vector<8x128xf32>
    %113 = arith.divf %111, %112 : vector<8x128xf32>
    %114 = arith.select %18, %108, %113 : vector<8x128xi1>, vector<8x128xf32>
    %115 = vector.extract_strided_slice %114 {offsets = [0, 0], sizes = [8, 32], strides = [1, 1]} : vector<8x128xf32> to vector<8x32xf32>
    %116 = vector.extract_strided_slice %114 {offsets = [0, 32], sizes = [8, 32], strides = [1, 1]} : vector<8x128xf32> to vector<8x32xf32>
    %117 = vector.extract_strided_slice %114 {offsets = [0, 64], sizes = [8, 32], strides = [1, 1]} : vector<8x128xf32> to vector<8x32xf32>
    %118 = vector.extract_strided_slice %114 {offsets = [0, 96], sizes = [8, 32], strides = [1, 1]} : vector<8x128xf32> to vector<8x32xf32>
    %119 = arith.mulf %116, %100 : vector<8x32xf32>
    %120 = arith.mulf %115, %117 : vector<8x32xf32>
    %121 = arith.addf %119, %120 : vector<8x32xf32>
    %122 = math.tanh %121 : vector<8x32xf32>
    %123 = arith.mulf %118, %122 : vector<8x32xf32>
    %124 = vector.extract_strided_slice %8 {offsets = [40, 0], sizes = [8, 128], strides = [1, 1]} : vector<64x128xf32> to vector<8x128xf32>
    %c0_37 = arith.constant 0 : index
    %c8_38 = arith.constant 8 : index
    %c0_39 = arith.constant 0 : index
    %125 = vector.load %arg3[%c0_37, %c8_38, %c0_39] : memref<1x88x128xf32, #tpu.memory_space<vmem>>, vector<1x32x128xf32>
    %126 = vector.shape_cast %125 : vector<1x32x128xf32> to vector<32x128xf32>
    %cst_40 = arith.constant dense<0.000000e+00> : vector<8x128xf32>
    %127 = tpu.matmul %123, %126, %cst_40 {dimension_numbers = #tpu.dot_dimension_numbers<[1], [0], [0], [1], [0, 0, 1, 1], [], []>} : vector<8x32xf32>, vector<32x128xf32>, vector<8x128xf32> -> vector<8x128xf32>
    %128 = arith.addf %124, %127 : vector<8x128xf32>
    %129 = math.tanh %128 : vector<8x128xf32>
    %130 = arith.negf %128 : vector<8x128xf32>
    %131 = math.exp %130 : vector<8x128xf32>
    %cst_41 = arith.constant 1.000000e+00 : f32
    %132 = vector.broadcast %cst_41 : f32 to vector<8x128xf32>
    %133 = arith.addf %132, %131 : vector<8x128xf32>
    %134 = arith.divf %132, %133 : vector<8x128xf32>
    %135 = arith.select %18, %129, %134 : vector<8x128xi1>, vector<8x128xf32>
    %136 = vector.extract_strided_slice %135 {offsets = [0, 0], sizes = [8, 32], strides = [1, 1]} : vector<8x128xf32> to vector<8x32xf32>
    %137 = vector.extract_strided_slice %135 {offsets = [0, 32], sizes = [8, 32], strides = [1, 1]} : vector<8x128xf32> to vector<8x32xf32>
    %138 = vector.extract_strided_slice %135 {offsets = [0, 64], sizes = [8, 32], strides = [1, 1]} : vector<8x128xf32> to vector<8x32xf32>
    %139 = vector.extract_strided_slice %135 {offsets = [0, 96], sizes = [8, 32], strides = [1, 1]} : vector<8x128xf32> to vector<8x32xf32>
    %140 = arith.mulf %137, %121 : vector<8x32xf32>
    %141 = arith.mulf %136, %138 : vector<8x32xf32>
    %142 = arith.addf %140, %141 : vector<8x32xf32>
    %143 = math.tanh %142 : vector<8x32xf32>
    %144 = arith.mulf %139, %143 : vector<8x32xf32>
    %145 = vector.extract_strided_slice %8 {offsets = [48, 0], sizes = [8, 128], strides = [1, 1]} : vector<64x128xf32> to vector<8x128xf32>
    %c0_42 = arith.constant 0 : index
    %c8_43 = arith.constant 8 : index
    %c0_44 = arith.constant 0 : index
    %146 = vector.load %arg3[%c0_42, %c8_43, %c0_44] : memref<1x88x128xf32, #tpu.memory_space<vmem>>, vector<1x32x128xf32>
    %147 = vector.shape_cast %146 : vector<1x32x128xf32> to vector<32x128xf32>
    %cst_45 = arith.constant dense<0.000000e+00> : vector<8x128xf32>
    %148 = tpu.matmul %144, %147, %cst_45 {dimension_numbers = #tpu.dot_dimension_numbers<[1], [0], [0], [1], [0, 0, 1, 1], [], []>} : vector<8x32xf32>, vector<32x128xf32>, vector<8x128xf32> -> vector<8x128xf32>
    %149 = arith.addf %145, %148 : vector<8x128xf32>
    %150 = math.tanh %149 : vector<8x128xf32>
    %151 = arith.negf %149 : vector<8x128xf32>
    %152 = math.exp %151 : vector<8x128xf32>
    %cst_46 = arith.constant 1.000000e+00 : f32
    %153 = vector.broadcast %cst_46 : f32 to vector<8x128xf32>
    %154 = arith.addf %153, %152 : vector<8x128xf32>
    %155 = arith.divf %153, %154 : vector<8x128xf32>
    %156 = arith.select %18, %150, %155 : vector<8x128xi1>, vector<8x128xf32>
    %157 = vector.extract_strided_slice %156 {offsets = [0, 0], sizes = [8, 32], strides = [1, 1]} : vector<8x128xf32> to vector<8x32xf32>
    %158 = vector.extract_strided_slice %156 {offsets = [0, 32], sizes = [8, 32], strides = [1, 1]} : vector<8x128xf32> to vector<8x32xf32>
    %159 = vector.extract_strided_slice %156 {offsets = [0, 64], sizes = [8, 32], strides = [1, 1]} : vector<8x128xf32> to vector<8x32xf32>
    %160 = vector.extract_strided_slice %156 {offsets = [0, 96], sizes = [8, 32], strides = [1, 1]} : vector<8x128xf32> to vector<8x32xf32>
    %161 = arith.mulf %158, %142 : vector<8x32xf32>
    %162 = arith.mulf %157, %159 : vector<8x32xf32>
    %163 = arith.addf %161, %162 : vector<8x32xf32>
    %164 = math.tanh %163 : vector<8x32xf32>
    %165 = arith.mulf %160, %164 : vector<8x32xf32>
    %166 = vector.extract_strided_slice %8 {offsets = [56, 0], sizes = [8, 128], strides = [1, 1]} : vector<64x128xf32> to vector<8x128xf32>
    %c0_47 = arith.constant 0 : index
    %c8_48 = arith.constant 8 : index
    %c0_49 = arith.constant 0 : index
    %167 = vector.load %arg3[%c0_47, %c8_48, %c0_49] : memref<1x88x128xf32, #tpu.memory_space<vmem>>, vector<1x32x128xf32>
    %168 = vector.shape_cast %167 : vector<1x32x128xf32> to vector<32x128xf32>
    %cst_50 = arith.constant dense<0.000000e+00> : vector<8x128xf32>
    %169 = tpu.matmul %165, %168, %cst_50 {dimension_numbers = #tpu.dot_dimension_numbers<[1], [0], [0], [1], [0, 0, 1, 1], [], []>} : vector<8x32xf32>, vector<32x128xf32>, vector<8x128xf32> -> vector<8x128xf32>
    %170 = arith.addf %166, %169 : vector<8x128xf32>
    %171 = math.tanh %170 : vector<8x128xf32>
    %172 = arith.negf %170 : vector<8x128xf32>
    %173 = math.exp %172 : vector<8x128xf32>
    %cst_51 = arith.constant 1.000000e+00 : f32
    %174 = vector.broadcast %cst_51 : f32 to vector<8x128xf32>
    %175 = arith.addf %174, %173 : vector<8x128xf32>
    %176 = arith.divf %174, %175 : vector<8x128xf32>
    %177 = arith.select %18, %171, %176 : vector<8x128xi1>, vector<8x128xf32>
    %178 = vector.extract_strided_slice %177 {offsets = [0, 0], sizes = [8, 32], strides = [1, 1]} : vector<8x128xf32> to vector<8x32xf32>
    %179 = vector.extract_strided_slice %177 {offsets = [0, 32], sizes = [8, 32], strides = [1, 1]} : vector<8x128xf32> to vector<8x32xf32>
    %180 = vector.extract_strided_slice %177 {offsets = [0, 64], sizes = [8, 32], strides = [1, 1]} : vector<8x128xf32> to vector<8x32xf32>
    %181 = vector.extract_strided_slice %177 {offsets = [0, 96], sizes = [8, 32], strides = [1, 1]} : vector<8x128xf32> to vector<8x32xf32>
    %182 = arith.mulf %179, %163 : vector<8x32xf32>
    %183 = arith.mulf %178, %180 : vector<8x32xf32>
    %184 = arith.addf %182, %183 : vector<8x32xf32>
    %185 = math.tanh %184 : vector<8x32xf32>
    %186 = arith.mulf %181, %185 : vector<8x32xf32>
    %c0_52 = arith.constant 0 : index
    %c48 = arith.constant 48 : index
    %c0_53 = arith.constant 0 : index
    %187 = vector.load %arg3[%c0_52, %c48, %c0_53] : memref<1x88x128xf32, #tpu.memory_space<vmem>>, vector<1x32x128xf32>
    %188 = vector.shape_cast %187 : vector<1x32x128xf32> to vector<32x128xf32>
    %cst_54 = arith.constant dense<0.000000e+00> : vector<8x128xf32>
    %189 = tpu.matmul %186, %188, %cst_54 {dimension_numbers = #tpu.dot_dimension_numbers<[1], [0], [0], [1], [0, 0, 1, 1], [], []>} : vector<8x32xf32>, vector<32x128xf32>, vector<8x128xf32> -> vector<8x128xf32>
    %c0_55 = arith.constant 0 : index
    %c80 = arith.constant 80 : index
    %c0_56 = arith.constant 0 : index
    %190 = vector.load %arg3[%c0_55, %c80, %c0_56] : memref<1x88x128xf32, #tpu.memory_space<vmem>>, vector<1x1x128xf32>
    %191 = vector.shape_cast %190 : vector<1x1x128xf32> to vector<1x128xf32>
    %192 = vector.broadcast %191 : vector<1x128xf32> to vector<8x128xf32>
    %193 = arith.addf %189, %192 : vector<8x128xf32>
    %194 = tpu.iota {dimensions = array<i32: 1>} : vector<8x128xi32>
    %c5_i32 = arith.constant 5 : i32
    %195 = vector.broadcast %c5_i32 : i32 to vector<8x128xi32>
    %196 = arith.cmpi sge, %194, %195 : vector<8x128xi32>
    %c22_i32 = arith.constant 22 : i32
    %197 = vector.broadcast %c22_i32 : i32 to vector<8x128xi32>
    %198 = arith.cmpi slt, %194, %197 : vector<8x128xi32>
    %199 = arith.andi %196, %198 : vector<8x128xi1>
    %c4_i32 = arith.constant 4 : i32
    %200 = vector.broadcast %c4_i32 : i32 to vector<8x128xi32>
    %201 = arith.cmpi slt, %194, %200 : vector<8x128xi32>
    %c4_i32_57 = arith.constant 4 : i32
    %202 = vector.broadcast %c4_i32_57 : i32 to vector<8x128xi32>
    %203 = arith.cmpi eq, %194, %202 : vector<8x128xi32>
    %c22_i32_58 = arith.constant 22 : i32
    %204 = vector.broadcast %c22_i32_58 : i32 to vector<8x128xi32>
    %205 = arith.cmpi eq, %194, %204 : vector<8x128xi32>
    %cst_59 = arith.constant 3.640000e+02 : f32
    %cst_60 = arith.constant 0.000000e+00 : f32
    %206 = vector.broadcast %cst_59 : f32 to vector<8x128xf32>
    %207 = vector.broadcast %cst_60 : f32 to vector<8x128xf32>
    %208 = arith.select %205, %206, %207 : vector<8x128xi1>, vector<8x128xf32>
    %cst_61 = arith.constant 1.000000e+03 : f32
    %209 = vector.broadcast %cst_61 : f32 to vector<8x128xf32>
    %210 = arith.select %203, %209, %208 : vector<8x128xi1>, vector<8x128xf32>
    %cst_62 = arith.constant 1.000000e+02 : f32
    %211 = vector.broadcast %cst_62 : f32 to vector<8x128xf32>
    %212 = arith.select %201, %211, %210 : vector<8x128xi1>, vector<8x128xf32>
    %213 = arith.negf %193 : vector<8x128xf32>
    %214 = math.exp %213 : vector<8x128xf32>
    %cst_63 = arith.constant 1.000000e+00 : f32
    %215 = vector.broadcast %cst_63 : f32 to vector<8x128xf32>
    %216 = arith.addf %215, %214 : vector<8x128xf32>
    %217 = arith.divf %215, %216 : vector<8x128xf32>
    %218 = arith.mulf %217, %212 : vector<8x128xf32>
    %cst_64 = arith.constant -1.000000e+30 : f32
    %219 = vector.broadcast %cst_64 : f32 to vector<8x128xf32>
    %220 = arith.select %199, %193, %219 : vector<8x128xi1>, vector<8x128xf32>
    %cst_65 = arith.constant dense<0xFF800000> : vector<8xf32>
    %221 = vector.multi_reduction <maximumf>, %220, %cst_65 [1] : vector<8x128xf32> to vector<8xf32>
    %222 = vector.shape_cast %221 : vector<8xf32> to vector<8x1xf32>
    %223 = vector.broadcast %222 : vector<8x1xf32> to vector<8x128xf32>
    %224 = arith.subf %220, %223 : vector<8x128xf32>
    %225 = math.exp %224 : vector<8x128xf32>
    %cst_66 = arith.constant 0.000000e+00 : f32
    %226 = vector.broadcast %cst_66 : f32 to vector<8x128xf32>
    %227 = arith.select %199, %225, %226 : vector<8x128xi1>, vector<8x128xf32>
    %cst_67 = arith.constant dense<0.000000e+00> : vector<8xf32>
    %228 = vector.multi_reduction <add>, %227, %cst_67 [1] : vector<8x128xf32> to vector<8xf32>
    %229 = vector.shape_cast %228 : vector<8xf32> to vector<8x1xf32>
    %230 = tpu.reciprocal %229 : vector<8x1xf32> -> vector<8x1xf32>
    %231 = vector.broadcast %230 : vector<8x1xf32> to vector<8x128xf32>
    %232 = arith.mulf %227, %231 : vector<8x128xf32>
    %233 = arith.select %199, %232, %218 : vector<8x128xi1>, vector<8x128xf32>
    %c0_68 = arith.constant 0 : index
    %c0_69 = arith.constant 0 : index
    %c0_70 = arith.constant 0 : index
    %234 = vector.load %arg4[%c0_68, %c0_69, %c0_70] : memref<1x8x128xf32, #tpu.memory_space<vmem>>, vector<1x8x128xf32>
    %235 = vector.shape_cast %234 : vector<1x8x128xf32> to vector<8x128xf32>
    %236 = vector.shape_cast %233 : vector<8x128xf32> to vector<1x8x128xf32>
    tpu.vector_store %arg4[%c0_68, %c0_69, %c0_70], %236 {strides = array<i32>} : memref<1x8x128xf32, #tpu.memory_space<vmem>>, vector<1x8x128xf32>,
    return
  }
  func.func @transform_0(%arg0: i32) -> (i32, i32, i32) {
    %c0_i32 = arith.constant 0 : i32
    %c0_i32_0 = arith.constant 0 : i32
    %c0_i32_1 = arith.constant 0 : i32
    return %arg0, %c0_i32, %c0_i32_0 : i32, i32, i32
  }
  func.func @transform_1(%arg0: i32) -> (i32, i32, i32) {
    %c0_i32 = arith.constant 0 : i32
    %c0_i32_0 = arith.constant 0 : i32
    %c0_i32_1 = arith.constant 0 : i32
    return %arg0, %c0_i32, %c0_i32_0 : i32, i32, i32
  }
  func.func @transform_2(%arg0: i32) -> (i32, i32, i32) {
    %c0_i32 = arith.constant 0 : i32
    %c0_i32_0 = arith.constant 0 : i32
    %c0_i32_1 = arith.constant 0 : i32
    return %arg0, %c0_i32, %c0_i32_0 : i32, i32, i32
  }
  func.func @transform_3(%arg0: i32) -> (i32, i32, i32) {
    %c0_i32 = arith.constant 0 : i32
    %c0_i32_0 = arith.constant 0 : i32
    %c0_i32_1 = arith.constant 0 : i32
    return %arg0, %c0_i32, %c0_i32_0 : i32, i32, i32
  }
}

</mosaic_0001>

<bundles_post_ra>
// kernel: lstm_prescriptor_population_forward.1
= control target key start
LH: loop header
LB: loop body
LE: loop exit
PB: predicated region body
PF: predicated region fallthrough
CT: control target
= control target key end

     0   :  { %vm50_vm0 = vcmask 1043456   ;;  %vm25_vm1 = vcmask 31744   ;;  %vm106_vm2 = vcmask 261120   ;;  %v97_v17 = vlaneseq  ;;  %s817_s30 = smov 64   ;;  %s818_s6 = smov 32   ;;  %s1054_s2 = inlined_call_operand.vmem [shape: f32[1,88,128], index: 2, kind: input, shape index: {}]   ;;  %s1055_s0 = inlined_call_operand.vmem [shape: f32[1,64,4], index: 0, kind: input, shape index: {}]   ;;  %s1056_s1 = inlined_call_operand.vmem [shape: f32[1,16,32], index: 1, kind: input, shape index: {}]   ;;  %s1057_s3 = inlined_call_operand.vmem [shape: f32[1,8,128], index: 3, kind: output, shape index: {}]  }
   0x1   :  { %v14_v0 = vld [vmem:[%s1054_s2] sm:$0xf]  ;;  %v21_v1 = vld [vmem:[%s1055_s0 + $0x28] sm:$0xff]  ;;  %v858_v4 = vld [vmem:[%s1054_s2 + $0x18] sm:$0xff] }
   0x2   :  { %v849_v2 = vld [vmem:[%s1054_s2 + $0x20] sm:$0xff]  ;;  %738 = vmatpush.msk.msra.mxu1 %vm50_vm0, %v14_v0  ;;  %711 = vmatpush.msk.msra.mxu0 %vm50_vm0, %v14_v0  ;;  %v865_v5 = vld [vmem:[%s1054_s2 + $0x10] sm:$0xff]  ;;  %v873_v6 = vld [vmem:[%s1054_s2 + $0x8] sm:$0xff]  ;;  %v907_v19 = vand.u32 127, %v97_v17 }
   0x3   :  { %v16_v3 = vld [vmem:[%s1055_s0] sm:$0xff]  ;;  %717 = vmatmul.msk.f32.vlgmr.msra.gmra.mxu1 %vm25_vm1, %v21_v1  ;;  %739 = vmatpush.msk.msra.mxu2 %vm50_vm0, %v14_v0  ;;  %v904_v10 = vld [vmem:[%s1054_s2 + $0x28] ss:$0 sm:$0xff]  ;;  %v22_v40 = vld [vmem:[%s1055_s0 + $0x30] sm:$0xff] }
   0x4   :  { %712 = vmatmul.msk.f32.vlgmr.msra.gmra.mxu0 %vm25_vm1, %v16_v3  ;;  %122 = vmatpush.msrb.mxu1 %v849_v2  ;;  %v95_v7 = vld [vmem:[%s1056_s1] sm:$0xff]  ;;  %vm99_vm3 = vcmp.ge.s32.totalorder %v907_v19, 64  ;;  %vm100_vm4 = vcmp.lt.s32.totalorder %v907_v19, 96  ;;  %v96_v32 = vld [vmem:[%s1056_s1 + $0x8] sm:$0xff]  ;;  %v23_v41 = vld [vmem:[%s1055_s0 + $0x38] sm:$0xff] }
   0x5   :  { %190 = vmatpush.msrb.mxu2 %v849_v2  ;;  %254 = vmatpush.msra.mxu3 %v849_v2  ;;  %vm911_vm6 = vmand %vm99_vm3, %vm100_vm4  ;;  %v17_v44 = vld [vmem:[%s1055_s0 + $0x8] sm:$0xff]  ;;  %v623_v25 = vld [vmem:[%s1054_s2 + $0x40] sm:$0xff] }
   0x6   :  { %123 = vmatpush.msrb.mxu1 %v858_v4  ;;  %718 = vmatmul.msk.f32.vlgmr.msra.gmra.mxu2 %vm25_vm1, %v22_v40 }
   0x7   :  { %191 = vmatpush.msrb.mxu2 %v858_v4  ;;  %255 = vmatpush.msra.mxu3 %v858_v4 }
   0x8   :  { %124 = vmatpush.msrb.mxu1 %v865_v5 }
   0x9   :  { %192 = vmatpush.msrb.mxu2 %v865_v5  ;;  %256 = vmatpush.msra.mxu3 %v865_v5 }
   0xa   :  { %125 = vmatpush.msrb.mxu1 %v873_v6 }
   0xb   :  { %720 = vmatmul.msk.f32.vlgmr.msrb.gmra.mxu1 %vm106_vm2, %v95_v7  ;;  %193 = vmatpush.msrb.mxu2 %v873_v6 }
   0xc   :  { %257 = vmatpush.msra.mxu3 %v873_v6  ;;  %318 = vmatpush.msra.mxu1 %v849_v2 }
   0xd   :  { %382 = vmatpush.msra.mxu2 %v849_v2  ;;  %713 = vmatmul.msk.f32.gmra.mxu0 %vm25_vm1, %v17_v44 }
   0xe   :  { %446 = vmatpush.msrb.mxu3 %v849_v2  ;;  %319 = vmatpush.msra.mxu1 %v858_v4 }
   0xf   :  { %383 = vmatpush.msra.mxu2 %v858_v4 }
  0x10   :  { %447 = vmatpush.msrb.mxu3 %v858_v4  ;;  %320 = vmatpush.msra.mxu1 %v865_v5 }
  0x11   :  { %384 = vmatpush.msra.mxu2 %v865_v5 }
  0x12   :  { %448 = vmatpush.msrb.mxu3 %v865_v5  ;;  %321 = vmatpush.msra.mxu1 %v873_v6 }
  0x13   :  { %385 = vmatpush.msra.mxu2 %v873_v6 }
  0x14   :  { %449 = vmatpush.msrb.mxu3 %v873_v6  ;;  %510 = vmatpush.msrb.mxu1 %v849_v2 }
  0x15   :  { %719 = vmatmul.msk.f32.gmra.mxu2 %vm25_vm1, %v23_v41 }
  0x16   :  { %511 = vmatpush.msrb.mxu1 %v858_v4 }
  0x18   :  { %512 = vmatpush.msrb.mxu1 %v865_v5 }
  0x1a   :  { %513 = vmatpush.msrb.mxu1 %v873_v6 }
  0x80   :  { %v899_v8 = vpop.f32.mrf.mxu1 }
  0x81   :  { %v71_v9 = vpop.f32.mrf.mxu0 }
  0x82   :  { %v72_v11 = vadd.f32 %v904_v10, %v71_v9 }
  0x88   :  { %v127_v12 = vpop.f32.mrf.mxu1 }
  0x89   :  { %v130_v13 = vadd.f32 %v127_v12, %v72_v11  ;;  %v946_v46 = vpop.f32.mrf.mxu2 }
  0x8a   :  { %v74_v48 = vpop.f32.mrf.mxu0 }
  0x8b   :  { %v721_v14 = vmul.f32 -1.442695, %v130_v13  ;;  %v75_v49 = vadd.f32 %v904_v10, %v74_v48 }
  0x8d   :  { %745 = vpow2.f32 %v721_v14 }
  0x93   :  { %v746_v15 = vpop.eup %745 }
  0x94   :  { %v135_v16 = vadd.f32 1.0, %v746_v15 }
  0x96   :  { %747 = vrcp.f32 %v135_v16  ;;  %v147_v22 = vand.u32 2147483648, %v135_v16  ;;  %v145_v24 = vand.u32 2147483647, %v135_v16  ;;  %vm141_vm7 = vweird.f32 %v135_v16 }
  0x97   :  { %749 = vtanh.f32 %v130_v13  ;;  %v18_v13 = vld [vmem:[%s1055_s0 + $0x10] sm:$0xff] }
  0x98   :  { %v148_v27 = vor.u32 1.1754944e-38, %v147_v22  ;;  %vm146_vm9 = vcmp.eq.f32.partialorder %v145_v24, 8.507059e+37  ;;  %v948_v47 = vpop.f32.mrf.mxu2  ;;  %714 = vmatmul.msk.f32.gmra.mxu0 %vm25_vm1, %v18_v13  ;;  %v20_v13 = vld [vmem:[%s1055_s0 + $0x20] sm:$0xff] }
  0x9c   :  { %v748_v18 = vpop.eup %747 }
  0x9d   :  { %v137_v20 = vmul.f32 %v748_v18, %v135_v16  ;;  %vm142_vm5 = vweird.f32 %v748_v18  ;;  %v750_v29 = vpop.eup %749 }
  0x9e   :  { %vm143_vm8 = vmor %vm141_vm7, %vm142_vm5 }
  0x9f   :  { %v138_v21 = vsub.f32 1.0, %v137_v20 }
  0xa1   :  { %v139_v23 = vmul.f32 %v748_v18, %v138_v21 }
  0xa3   :  { %v140_v26 = vadd.f32 %v748_v18, %v139_v23 }
  0xa5   :  { %v144_v28 = vsel %vm143_vm8, %v748_v18, %v140_v26 }
  0xa6   :  { %v149_v30 = vsel %vm146_vm9, %v148_v27, %v144_v28 }
  0xa7   :  { %v151_v31 = vsel %vm911_vm6, %v750_v29, %v149_v30 }
  0xa8   :  { %158 = vrot.lane.b32.xlu0 %v151_v31, %s817_s30 }
  0xb0   :  { %153 = vrot.lane.b32.xlu0 %v96_v32, %s818_s6 }
 0x115   :  { %v77_v15 = vpop.f32.mrf.mxu0 }
 0x116   :  { %v78_v16 = vadd.f32 %v904_v10, %v77_v15 }
 0x11a   :  { %v159_v33 = vpop.permute.xlu0 %158 }
 0x11b   :  { %v161_v34 = vmul.f32 %v159_v33, %v151_v31 }
 0x11d   :  { %163 = vrot.lane.b32.xlu1 %v161_v34, %s818_s6 }
 0x122   :  { %v154_v35 = vpop.permute.xlu0 %153 }
 0x123   :  { %v156_v36 = vmul.f32 %v154_v35, %v151_v31 }
 0x18f   :  { %v164_v37 = vpop.permute.xlu1 %163 }
 0x190   :  { %v166_v38 = vadd.f32 %v164_v37, %v156_v36 }
 0x192   :  { %751 = vtanh.f32 %v166_v38 }
 0x198   :  { %v752_v39 = vpop.eup %751 }
 0x199   :  { %169 = vrot.lane.b32.xlu1 %v752_v39, %s817_s30 }
 0x20b   :  { %v170_v42 = vpop.permute.xlu1 %169 }
 0x20c   :  { %v172_v43 = vmul.f32 %v170_v42, %v151_v31  ;;  %v19_v42 = vld [vmem:[%s1055_s0 + $0x18] sm:$0xff] }
 0x20d   :  { %715 = vmatmul.msk.f32.gmra.mxu0 %vm25_vm1, %v19_v42 }
 0x20e   :  { %174 = vrot.lane.b32.xlu2 %v172_v43, %s818_s6 }
 0x215   :  { %716 = vmatmul.msk.f32.gmra.mxu0 %vm25_vm1, %v20_v13 }
 0x268   :  { %v175_v45 = vpop.permute.xlu2 %174 }
 0x269   :  { %722 = vmatmul.msk.f32.vlgmr.msrb.gmra.mxu2 %vm106_vm2, %v175_v45 }
 0x26a   :  { %574 = vmatpush.msrb.mxu2 %v849_v2 }
 0x26c   :  { %575 = vmatpush.msrb.mxu2 %v858_v4 }
 0x26e   :  { %576 = vmatpush.msrb.mxu2 %v865_v5 }
 0x270   :  { %577 = vmatpush.msrb.mxu2 %v873_v6 }
 0x28a   :  { %v80_v48 = vpop.f32.mrf.mxu0 }
 0x292   :  { %v83_v15 = vpop.f32.mrf.mxu0 }
 0x2ec   :  { %v195_v50 = vpop.f32.mrf.mxu2 }
 0x2ed   :  { %v198_v51 = vadd.f32 %v195_v50, %v75_v49  ;;  %v81_v49 = vadd.f32 %v904_v10, %v80_v48 }
 0x2ef   :  { %v723_v52 = vmul.f32 -1.442695, %v198_v51 }
 0x2f1   :  { %753 = vpow2.f32 %v723_v52 }
 0x2f7   :  { %v754_v53 = vpop.eup %753 }
 0x2f8   :  { %v203_v54 = vadd.f32 1.0, %v754_v53 }
 0x2fa   :  { %755 = vrcp.f32 %v203_v54  ;;  %v215_v58 = vand.u32 2147483648, %v203_v54  ;;  %v213_v60 = vand.u32 2147483647, %v203_v54  ;;  %vm209_vm11 = vweird.f32 %v203_v54 }
 0x2fb   :  { %757 = vtanh.f32 %v198_v51 }
 0x2fc   :  { %v216_v62 = vor.u32 1.1754944e-38, %v215_v58  ;;  %vm214_vm13 = vcmp.eq.f32.partialorder %v213_v60, 8.507059e+37 }
 0x300   :  { %v756_v55 = vpop.eup %755 }
 0x301   :  { %v205_v56 = vmul.f32 %v756_v55, %v203_v54  ;;  %vm210_vm10 = vweird.f32 %v756_v55  ;;  %v758_v0 = vpop.eup %757 }
 0x302   :  { %vm211_vm12 = vmor %vm209_vm11, %vm210_vm10 }
 0x303   :  { %v206_v57 = vsub.f32 1.0, %v205_v56 }
 0x305   :  { %v207_v59 = vmul.f32 %v756_v55, %v206_v57 }
 0x307   :  { %v208_v61 = vadd.f32 %v756_v55, %v207_v59 }
 0x309   :  { %v212_v63 = vsel %vm211_vm12, %v756_v55, %v208_v61 }
 0x30a   :  { %v217_v1 = vsel %vm214_vm13, %v216_v62, %v212_v63 }
 0x30b   :  { %v219_v2 = vsel %vm911_vm6, %v758_v0, %v217_v1 }
 0x30c   :  { %222 = vrot.lane.b32.xlu2 %v219_v2, %s817_s30  ;;  %v220_v5 = vmul.f32 %v219_v2, %v166_v38 }
 0x366   :  { %v223_v3 = vpop.permute.xlu2 %222 }
 0x367   :  { %v225_v4 = vmul.f32 %v223_v3, %v219_v2 }
 0x369   :  { %227 = vrot.lane.b32.xlu0 %v225_v4, %s818_s6 }
 0x3db   :  { %v228_v6 = vpop.permute.xlu0 %227 }
 0x3dc   :  { %v230_v7 = vadd.f32 %v228_v6, %v220_v5 }
 0x3de   :  { %759 = vtanh.f32 %v230_v7 }
 0x3e4   :  { %v760_v9 = vpop.eup %759 }
 0x3e5   :  { %233 = vrot.lane.b32.xlu1 %v760_v9, %s817_s30 }
 0x457   :  { %v234_v11 = vpop.permute.xlu1 %233 }
 0x458   :  { %v236_v12 = vmul.f32 %v234_v11, %v219_v2 }
 0x45a   :  { %238 = vrot.lane.b32.xlu2 %v236_v12, %s818_s6 }
 0x4b4   :  { %v239_v14 = vpop.permute.xlu2 %238 }
 0x4b5   :  { %724 = vmatmul.msk.f32.vlgmr.msra.gmra.mxu3 %vm106_vm2, %v239_v14 }
 0x538   :  { %v259_v17 = vpop.f32.mrf.mxu3 }
 0x539   :  { %v262_v18 = vadd.f32 %v259_v17, %v78_v16  ;;  %v84_v16 = vadd.f32 %v904_v10, %v83_v15 }
 0x53b   :  { %v725_v20 = vmul.f32 -1.442695, %v262_v18 }
 0x53d   :  { %761 = vpow2.f32 %v725_v20 }
 0x543   :  { %v762_v21 = vpop.eup %761 }
 0x544   :  { %v267_v22 = vadd.f32 1.0, %v762_v21 }
 0x546   :  { %763 = vrcp.f32 %v267_v22  ;;  %v279_v27 = vand.u32 2147483648, %v267_v22  ;;  %v277_v29 = vand.u32 2147483647, %v267_v22  ;;  %vm273_vm15 = vweird.f32 %v267_v22 }
 0x547   :  { %765 = vtanh.f32 %v262_v18 }
 0x548   :  { %v280_v31 = vor.u32 1.1754944e-38, %v279_v27  ;;  %vm278_vm3 = vcmp.eq.f32.partialorder %v277_v29, 8.507059e+37 }
 0x54c   :  { %v764_v23 = vpop.eup %763 }
 0x54d   :  { %v269_v24 = vmul.f32 %v764_v23, %v267_v22  ;;  %vm274_vm14 = vweird.f32 %v764_v23  ;;  %v766_v33 = vpop.eup %765 }
 0x54e   :  { %vm275_vm0 = vmor %vm273_vm15, %vm274_vm14 }
 0x54f   :  { %v270_v26 = vsub.f32 1.0, %v269_v24 }
 0x551   :  { %v271_v28 = vmul.f32 %v764_v23, %v270_v26 }
 0x553   :  { %v272_v30 = vadd.f32 %v764_v23, %v271_v28 }
 0x555   :  { %v276_v32 = vsel %vm275_vm0, %v764_v23, %v272_v30 }
 0x556   :  { %v281_v34 = vsel %vm278_vm3, %v280_v31, %v276_v32 }
 0x557   :  { %v283_v35 = vsel %vm911_vm6, %v766_v33, %v281_v34 }
 0x558   :  { %286 = vrot.lane.b32.xlu0 %v283_v35, %s817_s30  ;;  %v284_v38 = vmul.f32 %v283_v35, %v230_v7 }
 0x5ca   :  { %v287_v36 = vpop.permute.xlu0 %286 }
 0x5cb   :  { %v289_v37 = vmul.f32 %v287_v36, %v283_v35 }
 0x5cd   :  { %291 = vrot.lane.b32.xlu1 %v289_v37, %s818_s6 }
 0x63f   :  { %v292_v39 = vpop.permute.xlu1 %291 }
 0x640   :  { %v294_v40 = vadd.f32 %v292_v39, %v284_v38 }
 0x642   :  { %767 = vtanh.f32 %v294_v40 }
 0x648   :  { %v768_v41 = vpop.eup %767 }
 0x649   :  { %297 = vrot.lane.b32.xlu2 %v768_v41, %s817_s30 }
 0x6a3   :  { %v298_v43 = vpop.permute.xlu2 %297 }
 0x6a4   :  { %v300_v44 = vmul.f32 %v298_v43, %v283_v35 }
 0x6a6   :  { %302 = vrot.lane.b32.xlu0 %v300_v44, %s818_s6 }
 0x718   :  { %v303_v45 = vpop.permute.xlu0 %302 }
 0x719   :  { %726 = vmatmul.msk.f32.vlgmr.msra.gmra.mxu1 %vm106_vm2, %v303_v45  ;;  %v87_v45 = vadd.f32 %v904_v10, %v899_v8 }
 0x796   :  { %v323_v50 = vpop.f32.mrf.mxu1 }
 0x797   :  { %v326_v51 = vadd.f32 %v323_v50, %v81_v49 }
 0x799   :  { %v727_v52 = vmul.f32 -1.442695, %v326_v51 }
 0x79b   :  { %769 = vpow2.f32 %v727_v52 }
 0x7a1   :  { %v770_v53 = vpop.eup %769 }
 0x7a2   :  { %v331_v54 = vadd.f32 1.0, %v770_v53 }
 0x7a4   :  { %771 = vrcp.f32 %v331_v54  ;;  %v343_v58 = vand.u32 2147483648, %v331_v54  ;;  %v341_v60 = vand.u32 2147483647, %v331_v54  ;;  %vm337_vm5 = vweird.f32 %v331_v54 }
 0x7a5   :  { %773 = vtanh.f32 %v326_v51 }
 0x7a6   :  { %v344_v62 = vor.u32 1.1754944e-38, %v343_v58  ;;  %vm342_vm8 = vcmp.eq.f32.partialorder %v341_v60, 8.507059e+37 }
 0x7aa   :  { %v772_v55 = vpop.eup %771 }
 0x7ab   :  { %v333_v56 = vmul.f32 %v772_v55, %v331_v54  ;;  %vm338_vm4 = vweird.f32 %v772_v55  ;;  %v774_v0 = vpop.eup %773 }
 0x7ac   :  { %vm339_vm7 = vmor %vm337_vm5, %vm338_vm4 }
 0x7ad   :  { %v334_v57 = vsub.f32 1.0, %v333_v56 }
 0x7af   :  { %v335_v59 = vmul.f32 %v772_v55, %v334_v57 }
 0x7b1   :  { %v336_v61 = vadd.f32 %v772_v55, %v335_v59 }
 0x7b3   :  { %v340_v63 = vsel %vm339_vm7, %v772_v55, %v336_v61 }
 0x7b4   :  { %v345_v1 = vsel %vm342_vm8, %v344_v62, %v340_v63 }
 0x7b5   :  { %v347_v2 = vsel %vm911_vm6, %v774_v0, %v345_v1 }
 0x7b6   :  { %350 = vrot.lane.b32.xlu1 %v347_v2, %s817_s30  ;;  %v348_v5 = vmul.f32 %v347_v2, %v294_v40 }
 0x828   :  { %v351_v3 = vpop.permute.xlu1 %350 }
 0x829   :  { %v353_v4 = vmul.f32 %v351_v3, %v347_v2 }
 0x82b   :  { %355 = vrot.lane.b32.xlu2 %v353_v4, %s818_s6 }
 0x885   :  { %v356_v6 = vpop.permute.xlu2 %355 }
 0x886   :  { %v358_v7 = vadd.f32 %v356_v6, %v348_v5 }
 0x888   :  { %775 = vtanh.f32 %v358_v7 }
 0x88e   :  { %v776_v9 = vpop.eup %775 }
 0x88f   :  { %361 = vrot.lane.b32.xlu0 %v776_v9, %s817_s30 }
 0x901   :  { %v362_v11 = vpop.permute.xlu0 %361 }
 0x902   :  { %v364_v12 = vmul.f32 %v362_v11, %v347_v2  ;;  %v90_v11 = vadd.f32 %v904_v10, %v946_v46 }
 0x904   :  { %366 = vrot.lane.b32.xlu1 %v364_v12, %s818_s6 }
 0x976   :  { %v367_v14 = vpop.permute.xlu1 %366 }
 0x977   :  { %728 = vmatmul.msk.f32.vlgmr.msra.gmra.mxu2 %vm106_vm2, %v367_v14 }
 0x9fa   :  { %v387_v17 = vpop.f32.mrf.mxu2 }
 0x9fb   :  { %v390_v18 = vadd.f32 %v387_v17, %v84_v16 }
 0x9fd   :  { %v729_v20 = vmul.f32 -1.442695, %v390_v18 }
 0x9ff   :  { %777 = vpow2.f32 %v729_v20 }
 0xa05   :  { %v778_v21 = vpop.eup %777 }
 0xa06   :  { %v395_v22 = vadd.f32 1.0, %v778_v21 }
 0xa08   :  { %779 = vrcp.f32 %v395_v22  ;;  %v407_v27 = vand.u32 2147483648, %v395_v22  ;;  %v405_v29 = vand.u32 2147483647, %v395_v22  ;;  %vm401_vm9 = vweird.f32 %v395_v22 }
 0xa09   :  { %781 = vtanh.f32 %v390_v18 }
 0xa0a   :  { %v408_v31 = vor.u32 1.1754944e-38, %v407_v27  ;;  %vm406_vm11 = vcmp.eq.f32.partialorder %v405_v29, 8.507059e+37 }
 0xa0e   :  { %v780_v23 = vpop.eup %779 }
 0xa0f   :  { %v397_v24 = vmul.f32 %v780_v23, %v395_v22  ;;  %vm402_vm1 = vweird.f32 %v780_v23  ;;  %v782_v33 = vpop.eup %781 }
 0xa10   :  { %vm403_vm10 = vmor %vm401_vm9, %vm402_vm1 }
 0xa11   :  { %v398_v26 = vsub.f32 1.0, %v397_v24 }
 0xa13   :  { %v399_v28 = vmul.f32 %v780_v23, %v398_v26 }
 0xa15   :  { %v400_v30 = vadd.f32 %v780_v23, %v399_v28 }
 0xa17   :  { %v404_v32 = vsel %vm403_vm10, %v780_v23, %v400_v30  ;;  %vm653_vm10 = vcmp.lt.s32.totalorder %v907_v19, 22 }
 0xa18   :  { %v409_v34 = vsel %vm406_vm11, %v408_v31, %v404_v32 }
 0xa19   :  { %v411_v35 = vsel %vm911_vm6, %v782_v33, %v409_v34 }
 0xa1a   :  { %414 = vrot.lane.b32.xlu2 %v411_v35, %s817_s30  ;;  %v412_v38 = vmul.f32 %v411_v35, %v358_v7 }
 0xa74   :  { %v415_v36 = vpop.permute.xlu2 %414 }
 0xa75   :  { %v417_v37 = vmul.f32 %v415_v36, %v411_v35 }
 0xa77   :  { %419 = vrot.lane.b32.xlu0 %v417_v37, %s818_s6 }
 0xae9   :  { %v420_v39 = vpop.permute.xlu0 %419 }
 0xaea   :  { %v422_v40 = vadd.f32 %v420_v39, %v412_v38  ;;  %v93_v39 = vadd.f32 %v904_v10, %v948_v47 }
 0xaec   :  { %783 = vtanh.f32 %v422_v40 }
 0xaf2   :  { %v784_v41 = vpop.eup %783 }
 0xaf3   :  { %425 = vrot.lane.b32.xlu1 %v784_v41, %s817_s30 }
 0xb65   :  { %v426_v42 = vpop.permute.xlu1 %425 }
 0xb66   :  { %v428_v43 = vmul.f32 %v426_v42, %v411_v35 }
 0xb68   :  { %430 = vrot.lane.b32.xlu2 %v428_v43, %s818_s6 }
 0xbc2   :  { %v431_v44 = vpop.permute.xlu2 %430 }
 0xbc3   :  { %730 = vmatmul.msk.f32.vlgmr.msrb.gmra.mxu3 %vm106_vm2, %v431_v44 }
 0xc46   :  { %v451_v48 = vpop.f32.mrf.mxu3 }
 0xc47   :  { %v454_v49 = vadd.f32 %v451_v48, %v87_v45 }
 0xc49   :  { %v731_v50 = vmul.f32 -1.442695, %v454_v49 }
 0xc4b   :  { %785 = vpow2.f32 %v731_v50 }
 0xc51   :  { %v786_v51 = vpop.eup %785 }
 0xc52   :  { %v459_v52 = vadd.f32 1.0, %v786_v51 }
 0xc54   :  { %787 = vrcp.f32 %v459_v52  ;;  %v471_v56 = vand.u32 2147483648, %v459_v52  ;;  %v469_v58 = vand.u32 2147483647, %v459_v52  ;;  %vm465_vm13 = vweird.f32 %v459_v52 }
 0xc55   :  { %789 = vtanh.f32 %v454_v49 }
 0xc56   :  { %v472_v60 = vor.u32 1.1754944e-38, %v471_v56  ;;  %vm470_vm15 = vcmp.eq.f32.partialorder %v469_v58, 8.507059e+37 }
 0xc5a   :  { %v788_v53 = vpop.eup %787 }
 0xc5b   :  { %v461_v54 = vmul.f32 %v788_v53, %v459_v52  ;;  %vm466_vm12 = vweird.f32 %v788_v53  ;;  %v790_v61 = vpop.eup %789 }
 0xc5c   :  { %vm467_vm14 = vmor %vm465_vm13, %vm466_vm12  ;;  %vm656_vm12 = vcmp.eq.s32.totalorder %v907_v19, 4 }
 0xc5d   :  { %v462_v55 = vsub.f32 1.0, %v461_v54 }
 0xc5f   :  { %v463_v57 = vmul.f32 %v788_v53, %v462_v55 }
 0xc61   :  { %v464_v59 = vadd.f32 %v788_v53, %v463_v57 }
 0xc63   :  { %v468_v8 = vsel %vm467_vm14, %v788_v53, %v464_v59 }
 0xc64   :  { %v473_v62 = vsel %vm470_vm15, %v472_v60, %v468_v8 }
 0xc65   :  { %v475_v63 = vsel %vm911_vm6, %v790_v61, %v473_v62  ;;  %v624_v62 = vld [vmem:[%s1054_s2 + $0x48] sm:$0xff] }
 0xc66   :  { %478 = vrot.lane.b32.xlu0 %v475_v63, %s817_s30  ;;  %v476_v2 = vmul.f32 %v475_v63, %v422_v40  ;;  %644 = vmatpush.msra.mxu3 %v624_v62 }
 0xc68   :  { %645 = vmatpush.msra.mxu3 %v623_v25 }
 0xcd8   :  { %v479_v0 = vpop.permute.xlu0 %478 }
 0xcd9   :  { %v481_v1 = vmul.f32 %v479_v0, %v475_v63  ;;  %v621_v0 = vld [vmem:[%s1054_s2 + $0x30] sm:$0xff] }
 0xcdb   :  { %483 = vrot.lane.b32.xlu1 %v481_v1, %s818_s6 }
 0xd4d   :  { %v484_v3 = vpop.permute.xlu1 %483 }
 0xd4e   :  { %v486_v4 = vadd.f32 %v484_v3, %v476_v2 }
 0xd50   :  { %791 = vtanh.f32 %v486_v4 }
 0xd56   :  { %v792_v5 = vpop.eup %791 }
 0xd57   :  { %489 = vrot.lane.b32.xlu2 %v792_v5, %s817_s30 }
 0xdb1   :  { %v490_v6 = vpop.permute.xlu2 %489 }
 0xdb2   :  { %v492_v7 = vmul.f32 %v490_v6, %v475_v63  ;;  %v622_v63 = vld [vmem:[%s1054_s2 + $0x38] sm:$0xff] }
 0xdb3   :  { %646 = vmatpush.msra.mxu3 %v622_v63 }
 0xdb4   :  { %494 = vrot.lane.b32.xlu0 %v492_v7, %s818_s6 }
 0xdb5   :  { %647 = vmatpush.msra.mxu3 %v621_v0 }
 0xe26   :  { %v495_v9 = vpop.permute.xlu0 %494 }
 0xe27   :  { %732 = vmatmul.msk.f32.vlgmr.msrb.gmra.mxu1 %vm106_vm2, %v495_v9 }
 0xea4   :  { %v515_v12 = vpop.f32.mrf.mxu1 }
 0xea5   :  { %v518_v13 = vadd.f32 %v515_v12, %v90_v11 }
 0xea7   :  { %v733_v14 = vmul.f32 -1.442695, %v518_v13 }
 0xea9   :  { %793 = vpow2.f32 %v733_v14 }
 0xeaf   :  { %v794_v15 = vpop.eup %793 }
 0xeb0   :  { %v523_v16 = vadd.f32 1.0, %v794_v15 }
 0xeb2   :  { %795 = vrcp.f32 %v523_v16  ;;  %v535_v21 = vand.u32 2147483648, %v523_v16  ;;  %v533_v23 = vand.u32 2147483647, %v523_v16  ;;  %vm529_vm3 = vweird.f32 %v523_v16 }
 0xeb3   :  { %797 = vtanh.f32 %v518_v13 }
 0xeb4   :  { %v536_v26 = vor.u32 1.1754944e-38, %v535_v21  ;;  %vm534_vm5 = vcmp.eq.f32.partialorder %v533_v23, 8.507059e+37 }
 0xeb8   :  { %v796_v17 = vpop.eup %795 }
 0xeb9   :  { %v525_v18 = vmul.f32 %v796_v17, %v523_v16  ;;  %vm530_vm0 = vweird.f32 %v796_v17  ;;  %v798_v27 = vpop.eup %797 }
 0xeba   :  { %vm531_vm4 = vmor %vm529_vm3, %vm530_vm0  ;;  %vm655_vm0 = vcmp.lt.s32.totalorder %v907_v19, 4 }
 0xebb   :  { %v526_v20 = vsub.f32 1.0, %v525_v18 }
 0xebd   :  { %v527_v22 = vmul.f32 %v796_v17, %v526_v20 }
 0xebf   :  { %v528_v24 = vadd.f32 %v796_v17, %v527_v22 }
 0xec1   :  { %v532_v46 = vsel %vm531_vm4, %v796_v17, %v528_v24 }
 0xec2   :  { %v537_v28 = vsel %vm534_vm5, %v536_v26, %v532_v46 }
 0xec3   :  { %v539_v29 = vsel %vm911_vm6, %v798_v27, %v537_v28  ;;  %v819_v27 = vmov 0.0  }
 0xec4   :  { %542 = vrot.lane.b32.xlu1 %v539_v29, %s817_s30  ;;  %v540_v32 = vmul.f32 %v539_v29, %v486_v4  ;;  %v744_v4 = vld [vmem:[%s1054_s2 + $0x50] ss:$0 sm:$0xff] }
 0xf36   :  { %v543_v30 = vpop.permute.xlu1 %542 }
 0xf37   :  { %v545_v31 = vmul.f32 %v543_v30, %v539_v29 }
 0xf39   :  { %547 = vrot.lane.b32.xlu2 %v545_v31, %s818_s6 }
 0xf93   :  { %v548_v33 = vpop.permute.xlu2 %547 }
 0xf94   :  { %v550_v34 = vadd.f32 %v548_v33, %v540_v32 }
 0xf96   :  { %799 = vtanh.f32 %v550_v34 }
 0xf9c   :  { %v800_v35 = vpop.eup %799 }
 0xf9d   :  { %553 = vrot.lane.b32.xlu0 %v800_v35, %s817_s30 }
0x100f   :  { %v554_v36 = vpop.permute.xlu0 %553 }
0x1010   :  { %v556_v37 = vmul.f32 %v554_v36, %v539_v29 }
0x1012   :  { %558 = vrot.lane.b32.xlu1 %v556_v37, %s818_s6 }
0x1084   :  { %v559_v38 = vpop.permute.xlu1 %558 }
0x1085   :  { %734 = vmatmul.msk.f32.vlgmr.msrb.gmra.mxu2 %vm106_vm2, %v559_v38 }
0x1108   :  { %v579_v40 = vpop.f32.mrf.mxu2 }
0x1109   :  { %v582_v41 = vadd.f32 %v579_v40, %v93_v39 }
0x110b   :  { %v735_v42 = vmul.f32 -1.442695, %v582_v41 }
0x110d   :  { %801 = vpow2.f32 %v735_v42 }
0x1113   :  { %v802_v43 = vpop.eup %801 }
0x1114   :  { %v587_v44 = vadd.f32 1.0, %v802_v43 }
0x1116   :  { %803 = vrcp.f32 %v587_v44  ;;  %v599_v50 = vand.u32 2147483648, %v587_v44  ;;  %v597_v52 = vand.u32 2147483647, %v587_v44  ;;  %vm593_vm8 = vweird.f32 %v587_v44 }
0x1117   :  { %805 = vtanh.f32 %v582_v41 }
0x1118   :  { %v600_v54 = vor.u32 1.1754944e-38, %v599_v50  ;;  %vm598_vm9 = vcmp.eq.f32.partialorder %v597_v52, 8.507059e+37 }
0x111c   :  { %v804_v45 = vpop.eup %803 }
0x111d   :  { %v589_v48 = vmul.f32 %v804_v45, %v587_v44  ;;  %vm594_vm7 = vweird.f32 %v804_v45  ;;  %v806_v47 = vpop.eup %805 }
0x111e   :  { %vm595_vm1 = vmor %vm593_vm8, %vm594_vm7 }
0x111f   :  { %v590_v49 = vsub.f32 1.0, %v589_v48 }
0x1121   :  { %v591_v51 = vmul.f32 %v804_v45, %v590_v49 }
0x1123   :  { %v592_v53 = vadd.f32 %v804_v45, %v591_v51 }
0x1125   :  { %v596_v10 = vsel %vm595_vm1, %v804_v45, %v592_v53 }
0x1126   :  { %v601_v55 = vsel %vm598_vm9, %v600_v54, %v596_v10 }
0x1127   :  { %v603_v56 = vsel %vm911_vm6, %v806_v47, %v601_v55  ;;  %vm652_vm6 = vcmp.ge.s32.totalorder %v907_v19, 5 }
0x1128   :  { %606 = vrot.lane.b32.xlu2 %v603_v56, %s817_s30  ;;  %v604_v59 = vmul.f32 %v603_v56, %v550_v34  ;;  %vm1038_vm11 = vmand %vm652_vm6, %vm653_vm10 }
0x1182   :  { %v607_v57 = vpop.permute.xlu2 %606 }
0x1183   :  { %v609_v58 = vmul.f32 %v607_v57, %v603_v56 }
0x1185   :  { %611 = vrot.lane.b32.xlu0 %v609_v58, %s818_s6 }
0x11f7   :  { %v612_v60 = vpop.permute.xlu0 %611 }
0x11f8   :  { %v614_v8 = vadd.f32 %v612_v60, %v604_v59 }
0x11fa   :  { %807 = vtanh.f32 %v614_v8 }
0x1200   :  { %v808_v61 = vpop.eup %807 }
0x1201   :  { %617 = vrot.lane.b32.xlu1 %v808_v61, %s817_s30 }
0x1273   :  { %v618_v1 = vpop.permute.xlu1 %617 }
0x1274   :  { %v620_v2 = vmul.f32 %v618_v1, %v603_v56 }
0x1276   :  { %628 = vrot.lane.b32.xlu2 %v620_v2, %s818_s6 }
0x12d0   :  { %v629_v3 = vpop.permute.xlu2 %628 }
0x12d1   :  { %736 = vmatmul.msk.f32.vlgmr.msra.gmra.mxu3 %vm106_vm2, %v629_v3  ;;  %vm657_vm2 = vcmp.eq.s32.totalorder %v907_v19, 22 }
0x12d2   :  { %v658_v28 = vsel %vm657_vm2, 364.0, %v819_v27 }
0x12d3   :  { %v659_v33 = vsel %vm656_vm12, 1000.0, %v658_v28 }
0x12d4   :  { %v660_v40 = vsel %vm655_vm0, 100.0, %v659_v33 }
0x1354   :  { %v649_v5 = vpop.f32.mrf.mxu3 }
0x1355   :  { %v650_v7 = vadd.f32 %v744_v4, %v649_v5 }
0x1357   :  { %v681_v9 = vsel %vm1038_vm11, %v650_v7, -1e+30  ;;  %v737_v16 = vmul.f32 -1.442695, %v650_v7 }
0x1358   :  { %682 = vmax.xlane.f32.xlu0 %v681_v9 }
0x13cb   :  { %v683_v11 = vpop.xlane.xlu0 %682 }
0x13cc   :  { %v684_v12 = vsub.f32 %v681_v9, %v683_v11 }
0x13ce   :  { %v685_v13 = vmul.f32 1.442695, %v684_v12 }
0x13d0   :  { %809 = vpow2.f32 %v685_v13 }
0x13d1   :  { %811 = vpow2.f32 %v737_v16 }
0x13d6   :  { %v810_v14 = vpop.eup %809 }
0x13d7   :  { %v687_v15 = vsel %vm1038_vm11, %v810_v14, 0.0  ;;  %v812_v17 = vpop.eup %811 }
0x13d8   :  { %688 = vadd.xlane.f32.xlu1 %v687_v15  ;;  %v664_v18 = vadd.f32 1.0, %v812_v17 }
0x13da   :  { %813 = vrcp.f32 %v664_v18  ;;  %v676_v30 = vand.u32 2147483648, %v664_v18  ;;  %vm670_vm14 = vweird.f32 %v664_v18  ;;  %v674_v31 = vand.u32 2147483647, %v664_v18 }
0x13dc   :  { %v677_v38 = vor.u32 1.1754944e-38, %v676_v30  ;;  %vm675_vm4 = vcmp.eq.f32.partialorder %v674_v31, 8.507059e+37 }
0x13e0   :  { %v814_v20 = vpop.eup %813 }
0x13e1   :  { %v666_v21 = vmul.f32 %v814_v20, %v664_v18  ;;  %vm671_vm13 = vweird.f32 %v814_v20 }
0x13e2   :  { %vm672_vm15 = vmor %vm670_vm14, %vm671_vm13 }
0x13e3   :  { %v667_v22 = vsub.f32 1.0, %v666_v21 }
0x13e5   :  { %v668_v24 = vmul.f32 %v814_v20, %v667_v22 }
0x13e7   :  { %v669_v46 = vadd.f32 %v814_v20, %v668_v24 }
0x13e9   :  { %v673_v35 = vsel %vm672_vm15, %v814_v20, %v669_v46 }
0x13ea   :  { %v678_v41 = vsel %vm675_vm4, %v677_v38, %v673_v35 }
0x13eb   :  { %v680_v45 = vmul.f32 %v678_v41, %v660_v40 }
0x144b   :  { %v689_v23 = vpop.xlane.xlu1 %688 }
0x144c   :  { %815 = vrcp.f32 %v689_v23  ;;  %v701_v34 = vand.u32 2147483648, %v689_v23  ;;  %v699_v37 = vand.u32 2147483647, %v689_v23  ;;  %vm695_vm5 = vweird.f32 %v689_v23 }
0x144e   :  { %v702_v42 = vor.u32 1.1754944e-38, %v701_v34  ;;  %vm700_vm8 = vcmp.eq.f32.partialorder %v699_v37, 8.507059e+37 }
0x1452   :  { %v816_v26 = vpop.eup %815 }
0x1453   :  { %v691_v29 = vmul.f32 %v816_v26, %v689_v23  ;;  %vm696_vm3 = vweird.f32 %v816_v26 }
0x1454   :  { %vm697_vm7 = vmor %vm695_vm5, %vm696_vm3 }
0x1455   :  { %v692_v32 = vsub.f32 1.0, %v691_v29 }
0x1457   :  { %v693_v36 = vmul.f32 %v816_v26, %v692_v32 }
0x1459   :  { %v694_v39 = vadd.f32 %v816_v26, %v693_v36 }
0x145b   :  { %v698_v43 = vsel %vm697_vm7, %v816_v26, %v694_v39 }
0x145c   :  { %v703_v44 = vsel %vm700_vm8, %v702_v42, %v698_v43 }
0x145d   :  { %v704_v48 = vmul.f32 %v703_v44, %v687_v15 }
0x145f   :  { %v705_v19 = vsel %vm1038_vm11, %v704_v48, %v680_v45 }
0x1460   :  { %706 = vst [vmem:[%s1057_s3] sm:$0xff] %v705_v19 }

</bundles_post_ra>
